<compile_context>
chip_gen: v7x
topology: tpu7x:2x2x1
jax: 0.10.0
libtpu: 0.0.40
codegen_flags: <defaults>
</compile_context>

<pallas_src>
import jax
import jax.numpy as jnp
from jax.experimental import pallas as pl
from jax.experimental.pallas import tpu as pltpu

_LANE = 128


def _ceil_to(n: int, m: int) -> int:
    return ((n + m - 1) // m) * m


def mlp_kernel(b_ref, x_ref, w1_ref, w2_ref, w3_ref, w4_ref, o_ref):
    # Hoist the scalar bias loads (SMEM) off the matmul critical path.
    b1 = b_ref[0]
    b2 = b_ref[1]
    b3 = b_ref[2]
    b4 = b_ref[3]
    cdt = w1_ref.dtype  # MXU operand dtype (bf16)

    # Cast the streamed f32 activations to the MXU dtype in-kernel (VPU cast
    # on a (tb, d_in) tile is free next to the HBM traffic it replaces).
    x = x_ref[...].astype(cdt)

    h = jnp.dot(x, w1_ref[...], preferred_element_type=jnp.float32) + b1
    h = jnp.dot(h.astype(cdt), w2_ref[...], preferred_element_type=jnp.float32) + b2
    h = jnp.dot(h.astype(cdt), w3_ref[...], preferred_element_type=jnp.float32) + b3
    h = jnp.dot(h.astype(cdt), w4_ref[...], preferred_element_type=jnp.float32) + b4
    # h is (tb, d_out) f32 — store only the real output lanes (no padding).
    o_ref[...] = jax.nn.sigmoid(h).astype(o_ref.dtype)


def neural_net_forward(images, w1, w2, w3, w4, biases, *,
                       block_b: int = 1024, compute_dtype=jnp.bfloat16):
    """Pallas equivalent of NeuralNet.forward.

    images: [B, d_in] float32
    wN:     [d_{N-1}, d_N] float32
    biases: [4] float32 (one scalar bias per layer, broadcast-added, matching
            the PyTorch module's nn.Parameter(torch.randn(1)) biases).
    """
    B, d_in = images.shape
    d1, d2, d3, d_out = w1.shape[1], w2.shape[1], w3.shape[1], w4.shape[1]
    assert w1.shape[0] == d_in and w2.shape[0] == d1
    assert w3.shape[0] == d2 and w4.shape[0] == d3

    # Pad HIDDEN feature dims to the 128-lane width (keeps intermediates
    # lane-dense).  The input dim and the OUTPUT dim stay unpadded: d_in to
    # keep the streamed activation DMA minimal, d_out to keep the output
    # store / HBM writeback narrow.
    d1p, d2p, d3p = (_ceil_to(d, _LANE) for d in (d1, d2, d3))

    def pad2(a, rows, cols):
        return jnp.pad(a, ((0, rows - a.shape[0]), (0, cols - a.shape[1])))

    # Padded weight ROWS are zero, so bias values leaking into padded hidden
    # columns are annihilated by the next layer (numerics unchanged).
    w1p = pad2(w1, d_in, d1p).astype(compute_dtype)
    w2p = pad2(w2, d1p, d2p).astype(compute_dtype)
    w3p = pad2(w3, d2p, d3p).astype(compute_dtype)
    w4p = pad2(w4, d3p, d_out).astype(compute_dtype)  # output dim unpadded

    # Batch tile: multiple of 8 sublanes, capped at ~half the batch so the
    # grid has >= 2 "parallel" steps whenever B > 8 (both v7x TensorCores
    # get work); block_b bounds VMEM use for large batches.
    half_b = -(-B // 2)
    tb = max(8, min(block_b, _ceil_to(half_b, 8)))
    bp = _ceil_to(B, tb)
    # Only pad (f32, no cast) when the batch is ragged; aligned batches skip
    # this pass entirely.
    x_p = images if bp == B else jnp.pad(images, ((0, bp - B), (0, 0)))

    out = pl.pallas_call(
        mlp_kernel,
        out_shape=jax.ShapeDtypeStruct((bp, d_out), jnp.float32),
        grid_spec=pltpu.PrefetchScalarGridSpec(
            num_scalar_prefetch=1,          # biases -> SMEM
            grid=(bp // tb,),
            in_specs=[
                # Activations stream one batch tile per grid step (f32).
                pl.BlockSpec((tb, d_in), lambda i, b: (i, 0)),
                # Weights: constant index_map -> fetched once, VMEM-resident.
                pl.BlockSpec((d_in, d1p), lambda i, b: (0, 0)),
                pl.BlockSpec((d1p, d2p), lambda i, b: (0, 0)),
                pl.BlockSpec((d2p, d3p), lambda i, b: (0, 0)),
                pl.BlockSpec((d3p, d_out), lambda i, b: (0, 0)),
            ],
            # Narrow (d_out-lane) output tile: ~8x less output HBM traffic
            # than a 128-lane-padded f32 slab; block last dim == full dim.
            out_specs=pl.BlockSpec((tb, d_out), lambda i, b: (i, 0)),
        ),
        compiler_params=pltpu.CompilerParams(
            dimension_semantics=("parallel",),  # shard batch tiles across TCs
            vmem_limit_bytes=32 * 1024 * 1024,  # sized against v7x's 64 MiB
        ),
    )(biases.astype(jnp.float32), x_p, w1p, w2p, w3p, w4p)

    # Only trim batch padding (cheap, d_out lanes); no lane padding to strip.
    return out if bp == B else out[:B]


if __name__ == "__main__":
    # Same structure as the PyTorch module: layer_sizes = [in, h1, h2, h3, out].
    layer_sizes = [32, 64, 64, 32, 16]
    batch = 50  # not a multiple of the batch tile -> exercises ragged padding

    key = jax.random.PRNGKey(0)
    k_x, k1, k2, k3, k4, kb = jax.random.split(key, 6)

    # Weights scaled by 1/sqrt(fan_in) so pre-activations stay O(1); keeps the
    # bf16-vs-f32 comparison meaningful. Kernel semantics are unchanged.
    def make_w(k, fan_in, fan_out):
        return jax.random.normal(k, (fan_in, fan_out), jnp.float32) / jnp.sqrt(fan_in)

    images = jax.random.normal(k_x, (batch, layer_sizes[0]), jnp.float32)
    w1 = make_w(k1, layer_sizes[0], layer_sizes[1])
    w2 = make_w(k2, layer_sizes[1], layer_sizes[2])
    w3 = make_w(k3, layer_sizes[2], layer_sizes[3])
    w4 = make_w(k4, layer_sizes[3], layer_sizes[4])
    biases = jax.random.normal(kb, (4,), jnp.float32)

    fwd = jax.jit(neural_net_forward)
    out = fwd(images, w1, w2, w3, w4, biases)
    out = jax.block_until_ready(out)

    # Plain-JAX f32 reference (same semantics as the PyTorch forward).
    ref = images @ w1 + biases[0]
    ref = ref @ w2 + biases[1]
    ref = ref @ w3 + biases[2]
    ref = ref @ w4 + biases[3]
    ref = jax.nn.sigmoid(ref)

    assert out.shape == (batch, layer_sizes[4]), out.shape
    max_err = float(jnp.max(jnp.abs(out - ref)))
    # bf16 MXU operands -> loosened tolerance vs the pure-f32 reference.
    assert jnp.allclose(out, ref, atol=3e-2, rtol=3e-2), f"max_err={max_err}"

    print("KERNEL_OK")
</pallas_src>

<mosaic_0001>
module attributes {stable_mosaic.version = 11 : i64} {
  func.func @mlp_kernel(%arg0: i32, %arg1: memref<4xf32, #tpu.memory_space<smem>>, %arg2: memref<32x32xf32, #tpu.memory_space<vmem>>, %arg3: memref<32x128xbf16, #tpu.memory_space<vmem>>, %arg4: memref<128x128xbf16, #tpu.memory_space<vmem>>, %arg5: memref<128x128xbf16, #tpu.memory_space<vmem>>, %arg6: memref<128x16xbf16, #tpu.memory_space<vmem>>, %arg7: memref<32x16xf32, #tpu.memory_space<vmem>>) attributes {dimension_semantics = [#tpu.dimension_semantics<parallel>], iteration_bounds = array<i64: 2>, scalar_prefetch = 1 : i64, scratch_operands = 0 : i64, tpu.core_type = #tpu.core_type<tc>, window_params = [{transform_indices = @transform_0, window_bounds = array<i64: 32, 32>}, {pipeline_mode = #tpu.pipeline_mode<synchronous>, transform_indices = @transform_1, window_bounds = array<i64: 32, 128>}, {pipeline_mode = #tpu.pipeline_mode<synchronous>, transform_indices = @transform_2, window_bounds = array<i64: 128, 128>}, {pipeline_mode = #tpu.pipeline_mode<synchronous>, transform_indices = @transform_3, window_bounds = array<i64: 128, 128>}, {pipeline_mode = #tpu.pipeline_mode<synchronous>, transform_indices = @transform_4, window_bounds = array<i64: 128, 16>}, {transform_indices = @transform_5, window_bounds = array<i64: 32, 16>}]} {
    %c0 = arith.constant 0 : index
    %0 = memref.load %arg1[%c0] : memref<4xf32, #tpu.memory_space<smem>>
    %c1 = arith.constant 1 : index
    %1 = memref.load %arg1[%c1] : memref<4xf32, #tpu.memory_space<smem>>
    %c2 = arith.constant 2 : index
    %2 = memref.load %arg1[%c2] : memref<4xf32, #tpu.memory_space<smem>>
    %c3 = arith.constant 3 : index
    %3 = memref.load %arg1[%c3] : memref<4xf32, #tpu.memory_space<smem>>
    %c0_0 = arith.constant 0 : index
    %c0_1 = arith.constant 0 : index
    %4 = vector.load %arg2[%c0_0, %c0_1] : memref<32x32xf32, #tpu.memory_space<vmem>>, vector<32x32xf32>
    %5 = arith.truncf %4 : vector<32x32xf32> to vector<32x32xbf16>
    %c0_2 = arith.constant 0 : index
    %c0_3 = arith.constant 0 : index
    %6 = vector.load %arg3[%c0_2, %c0_3] : memref<32x128xbf16, #tpu.memory_space<vmem>>, vector<32x128xbf16>
    %cst = arith.constant dense<0.000000e+00> : vector<32x128xf32>
    %7 = tpu.matmul %5, %6, %cst {dimension_numbers = #tpu.dot_dimension_numbers<[1], [0], [0], [1], [0, 0, 1, 1], [], []>} : vector<32x32xbf16>, vector<32x128xbf16>, vector<32x128xf32> -> vector<32x128xf32>
    %8 = vector.broadcast %0 : f32 to vector<32x128xf32>
    %9 = arith.addf %7, %8 : vector<32x128xf32>
    %10 = arith.truncf %9 : vector<32x128xf32> to vector<32x128xbf16>
    %c0_4 = arith.constant 0 : index
    %c0_5 = arith.constant 0 : index
    %11 = vector.load %arg4[%c0_4, %c0_5] : memref<128x128xbf16, #tpu.memory_space<vmem>>, vector<128x128xbf16>
    %cst_6 = arith.constant dense<0.000000e+00> : vector<32x128xf32>
    %12 = tpu.matmul %10, %11, %cst_6 {dimension_numbers = #tpu.dot_dimension_numbers<[1], [0], [0], [1], [0, 0, 1, 1], [], []>} : vector<32x128xbf16>, vector<128x128xbf16>, vector<32x128xf32> -> vector<32x128xf32>
    %13 = vector.broadcast %1 : f32 to vector<32x128xf32>
    %14 = arith.addf %12, %13 : vector<32x128xf32>
    %15 = arith.truncf %14 : vector<32x128xf32> to vector<32x128xbf16>
    %c0_7 = arith.constant 0 : index
    %c0_8 = arith.constant 0 : index
    %16 = vector.load %arg5[%c0_7, %c0_8] : memref<128x128xbf16, #tpu.memory_space<vmem>>, vector<128x128xbf16>
    %cst_9 = arith.constant dense<0.000000e+00> : vector<32x128xf32>
    %17 = tpu.matmul %15, %16, %cst_9 {dimension_numbers = #tpu.dot_dimension_numbers<[1], [0], [0], [1], [0, 0, 1, 1], [], []>} : vector<32x128xbf16>, vector<128x128xbf16>, vector<32x128xf32> -> vector<32x128xf32>
    %18 = vector.broadcast %2 : f32 to vector<32x128xf32>
    %19 = arith.addf %17, %18 : vector<32x128xf32>
    %20 = arith.truncf %19 : vector<32x128xf32> to vector<32x128xbf16>
    %c0_10 = arith.constant 0 : index
    %c0_11 = arith.constant 0 : index
    %21 = vector.load %arg6[%c0_10, %c0_11] : memref<128x16xbf16, #tpu.memory_space<vmem>>, vector<128x16xbf16>
    %cst_12 = arith.constant dense<0.000000e+00> : vector<32x16xf32>
    %22 = tpu.matmul %20, %21, %cst_12 {dimension_numbers = #tpu.dot_dimension_numbers<[1], [0], [0], [1], [0, 0, 1, 1], [], []>} : vector<32x128xbf16>, vector<128x16xbf16>, vector<32x16xf32> -> vector<32x16xf32>
    %23 = vector.broadcast %3 : f32 to vector<32x16xf32>
    %24 = arith.addf %22, %23 : vector<32x16xf32>
    %25 = arith.negf %24 : vector<32x16xf32>
    %26 = math.exp %25 : vector<32x16xf32>
    %cst_13 = arith.constant 1.000000e+00 : f32
    %27 = vector.broadcast %cst_13 : f32 to vector<32x16xf32>
    %28 = arith.addf %27, %26 : vector<32x16xf32>
    %29 = arith.divf %27, %28 : vector<32x16xf32>
    %c0_14 = arith.constant 0 : index
    %c0_15 = arith.constant 0 : index
    %30 = vector.load %arg7[%c0_14, %c0_15] : memref<32x16xf32, #tpu.memory_space<vmem>>, vector<32x16xf32>
    tpu.vector_store %arg7[%c0_14, %c0_15], %29 {strides = array<i32>} : memref<32x16xf32, #tpu.memory_space<vmem>>, vector<32x16xf32>,
    return
  }
  func.func @transform_0(%arg0: i32, %arg1: memref<4xf32, #tpu.memory_space<smem>>) -> (i32, i32) {
    %c0_i32 = arith.constant 0 : i32
    %c0_i32_0 = arith.constant 0 : i32
    return %arg0, %c0_i32 : i32, i32
  }
  func.func @transform_1(%arg0: i32, %arg1: memref<4xf32, #tpu.memory_space<smem>>) -> (i32, i32) {
    %c0_i32 = arith.constant 0 : i32
    %c0_i32_0 = arith.constant 0 : i32
    %c0_i32_1 = arith.constant 0 : i32
    return %c0_i32, %c0_i32_0 : i32, i32
  }
  func.func @transform_2(%arg0: i32, %arg1: memref<4xf32, #tpu.memory_space<smem>>) -> (i32, i32) {
    %c0_i32 = arith.constant 0 : i32
    %c0_i32_0 = arith.constant 0 : i32
    %c0_i32_1 = arith.constant 0 : i32
    return %c0_i32, %c0_i32_0 : i32, i32
  }
  func.func @transform_3(%arg0: i32, %arg1: memref<4xf32, #tpu.memory_space<smem>>) -> (i32, i32) {
    %c0_i32 = arith.constant 0 : i32
    %c0_i32_0 = arith.constant 0 : i32
    %c0_i32_1 = arith.constant 0 : i32
    return %c0_i32, %c0_i32_0 : i32, i32
  }
  func.func @transform_4(%arg0: i32, %arg1: memref<4xf32, #tpu.memory_space<smem>>) -> (i32, i32) {
    %c0_i32 = arith.constant 0 : i32
    %c0_i32_0 = arith.constant 0 : i32
    %c0_i32_1 = arith.constant 0 : i32
    return %c0_i32, %c0_i32_0 : i32, i32
  }
  func.func @transform_5(%arg0: i32, %arg1: memref<4xf32, #tpu.memory_space<smem>>) -> (i32, i32) {
    %c0_i32 = arith.constant 0 : i32
    %c0_i32_0 = arith.constant 0 : i32
    return %arg0, %c0_i32 : i32, i32
  }
}

</mosaic_0001>

<bundles_post_ra>
// kernel: neural_net_forward.1
= control target key start
LH: loop header
LB: loop body
LE: loop exit
PB: predicated region body
PF: predicated region fallthrough
CT: control target
= control target key end

     0   :  { %s1114_s0 = inlined_call_operand.vmem [shape: f32[4], index: 0, kind: input, shape index: {}]   ;;  %s1115_s1 = inlined_call_operand.vmem [shape: f32[64,32], index: 1, kind: input, shape index: {}]   ;;  %s1116_s2 = inlined_call_operand.vmem [shape: bf16[32,128], index: 2, kind: input, shape index: {}]   ;;  %s1117_s3 = inlined_call_operand.vmem [shape: bf16[128,128], index: 3, kind: input, shape index: {}]   ;;  %s1118_s4 = inlined_call_operand.vmem [shape: bf16[128,128], index: 4, kind: input, shape index: {}]   ;;  %s1119_s5 = inlined_call_operand.vmem [shape: bf16[128,16], index: 5, kind: input, shape index: {}]   ;;  %s1120_s6 = inlined_call_operand.vmem [shape: f32[64,16], index: 6, kind: output, shape index: {}]  }
   0x1   :  { %s11_s23 = sshll.u32 %s1114_s0, 4  ;;  %s12_s23 = int_to_ptr.vmem [resolvable:$true] %s11_s23 }
   0x2   :  { %s951_s24 = scalar_lea.vmem %s12_s23, 16  ;;  %p956_p1 = scmp.lt.s32.totalorder %s12_s23, %s12_s23 }
   0x3   :  { %p952_p0 = scmp.ne.s32.totalorder %s12_s23, %s951_s24  ;;  %p957_p2 = scmp.lt.s32.totalorder %s951_s24, %s951_s24 }
   0x5   :  { %p958_p3 = por %p957_p2, %p956_p1 }
   0x7   :  { %p959_p4 = pnand %p958_p3, %p952_p0 }
   0x9   :  { %962 = shalt.err (!%p959_p4)  }
   0xa   :  { %s973_s25 = smov [#allocation3]  }
   0xb   :  { %14 = dma.vmem_to_smem %s12_s23, 16, %s973_s25, [#allocation2] }
   0xc   :  { %967 = dma.done.wait [#allocation2], 16 }
   0xd   :  { %968 = vsyncadd [#allocation2], 4294967280 }
   0xe   :  { %16 = sfence }
   0xf   :  { %s1012_s26 = smov 0  }
  0x10 LB: > { %s752_s0 = sadd.s32 4294967295, %s971_s26   ;;  %p756_p5 = scmp.ge.s32.totalorder %s971_s26, 1  ;;  %s971_s26 = sphi %s1012_s26, %s22_s26  }
  0x11   : > { %p195_p6 = scmp.lt.s32.totalorder %s971_s26, 3 }
  0x13   : > { %p196_p7 = pnand %p756_p5, %p195_p6 }
  0x14   : > { %v909_v0 = vld [vmem:[%s1116_s2] sm:$0xff] (!%p196_p7)   ;;  %s757_s29 = sshll.u32 (!%p196_p7), %s752_s0, 2  ;;  %v910_v1 = vld [vmem:[%s1116_s2 + $0x8] sm:$0xff] (!%p196_p7)   ;;  %v913_v4 = vld [vmem:[%s1117_s3 + $0x10] sm:$0xff] (!%p196_p7)   ;;  %vm263_vm0 = vcmask (!%p196_p7), 261120   ;;  %s236_s18 = sld [smem:[#allocation3]] (!%p196_p7) }
  0x15   : > { %199 = sbr.rel (%p196_p7) target bundleno = 941 (0x3ad), region = 40  ;;  %p224_p8 = scmp.lt.s32.totalorder (!%p196_p7), %s757_s29, 7  ;;  %832 = vmatprep.subr.bf16.mxu0 (!%p196_p7), %v909_v0  ;;  %v911_v2 = vld [vmem:[%s1117_s3] sm:$0xff] (!%p196_p7)   ;;  %v912_v3 = vld [vmem:[%s1117_s3 + $0x8] sm:$0xff] (!%p196_p7)   ;;  %v914_v11 = vld [vmem:[%s1117_s3 + $0x18] sm:$0xff] (!%p196_p7)   ;;  %vm691_vm1 = vcmask (!%p196_p7), 130048  }
  0x16   : > { %833 = vmatpush3.bf16.msra.mxu0 (!%p196_p7), %v909_v0  ;;  %840 = vmatprep.subr.bf16.mxu1 (!%p196_p7), %v911_v2  ;;  %v915_v12 = vld [vmem:[%s1117_s3 + $0x20] sm:$0xff] (!%p196_p7)   ;;  %v916_v13 = vld [vmem:[%s1117_s3 + $0x28] sm:$0xff] (!%p196_p7)   ;;  %v917_v14 = vld [vmem:[%s1117_s3 + $0x30] sm:$0xff] (!%p196_p7)   ;;  %s761_s13 = sld [smem:[#allocation3 + $0x1]] (!%p196_p7)  ;;  %s763_s19 = sld [smem:[#allocation3 + $0x3]] (!%p196_p7) }
  0x17   : > { %834 = vmatprep.subr.bf16.mxu0 (!%p196_p7), %v910_v1  ;;  %841 = vmatpush3.bf16.msra.mxu1 (!%p196_p7), %v911_v2  ;;  %v918_v15 = vld [vmem:[%s1117_s3 + $0x38] sm:$0xff] (!%p196_p7)   ;;  %v919_v16 = vld [vmem:[%s1118_s4] sm:$0xff] (!%p196_p7)   ;;  %v920_v17 = vld [vmem:[%s1118_s4 + $0x8] sm:$0xff] (!%p196_p7)  }
  0x18   : > { %842 = vmatprep.subr.bf16.mxu1 (!%p196_p7), %v912_v3  ;;  %v921_v18 = vld [vmem:[%s1118_s4 + $0x10] sm:$0xff] (!%p196_p7)   ;;  %v922_v19 = vld [vmem:[%s1118_s4 + $0x18] sm:$0xff] (!%p196_p7)   ;;  %v923_v20 = vld [vmem:[%s1118_s4 + $0x20] sm:$0xff] (!%p196_p7)  }
  0x19   : > { %v924_v21 = vld [vmem:[%s1118_s4 + $0x28] sm:$0xff] (!%p196_p7)   ;;  %v925_v33 = vld [vmem:[%s1118_s4 + $0x30] sm:$0xff] (!%p196_p7)   ;;  %v926_v34 = vld [vmem:[%s1118_s4 + $0x38] sm:$0xff] (!%p196_p7)  }
  0x1a   : > { %835 = vmatpush3.bf16.msra.mxu0 (!%p196_p7), %v910_v1  ;;  %v250_v22 = vstv (!%p196_p7), %s236_s18  ;;  %v927_v35 = vld [vmem:[%s1119_s5] sm:$0xff] (!%p196_p7)   ;;  %v928_v36 = vld [vmem:[%s1119_s5 + $0x8] sm:$0xff] (!%p196_p7)   ;;  %v929_v37 = vld [vmem:[%s1119_s5 + $0x10] sm:$0xff] (!%p196_p7)   ;;  %s762_s18 = sld [smem:[#allocation3 + $0x2]] (!%p196_p7) }
  0x1b   : > { %843 = vmatpush3.bf16.msra.mxu1 (!%p196_p7), %v912_v3  ;;  %860 = vmatprep.subr.bf16.mxu0 (!%p196_p7), %v919_v16  ;;  %v930_v38 = vld [vmem:[%s1119_s5 + $0x18] sm:$0xff] (!%p196_p7)   ;;  %v931_v39 = vld [vmem:[%s1119_s5 + $0x20] sm:$0xff] (!%p196_p7)   ;;  %v932_v40 = vld [vmem:[%s1119_s5 + $0x28] sm:$0xff] (!%p196_p7)  }
  0x1c   : > { %s1122_s29 = smov (!%p224_p8, %s757_s29), 7  ;;  %844 = vmatprep.subr.bf16.mxu1 %v913_v4  ;;  %v337_v41 = vstv %s761_s13  ;;  %v933_v52 = vld [vmem:[%s1119_s5 + $0x30] sm:$0xff]   ;;  %v934_v53 = vld [vmem:[%s1119_s5 + $0x38] sm:$0xff]   ;;  %v569_v1 = vstv %s763_s19 }
  0x1d   : > { %s758_s12 = sshll.u32 %s1122_s29, 3 }
  0x1e   : > { %s227_s15 = scalar_lea.vmem %s1115_s1, %s758_s12  ;;  %s233_s22 = scalar_lea.vmem %s1120_s6, %s758_s12 }
  0x1f   : > { %v240_v5 = vld [vmem:[%s227_s15] sm:$0xff]  ;;  %v241_v6 = vld [vmem:[%s227_s15 + $0x8] sm:$0xff]  ;;  %v242_v7 = vld [vmem:[%s227_s15 + $0x10] sm:$0xff]  ;;  %845 = vmatpush3.bf16.msra.mxu1 %v913_v4 }
  0x20   : > { %v244_v8 = vpack.c.bf16 %v241_v6, %v240_v5  ;;  %v243_v9 = vld [vmem:[%s227_s15 + $0x18] sm:$0xff]  ;;  %846 = vmatprep.subr.bf16.mxu1 %v914_v11  ;;  %v453_v54 = vstv %s762_s18 }
  0x21   : > { %v245_v10 = vpack.c.bf16 %v243_v9, %v242_v7 }
  0x22   : > { %836 = vmatprep.mubr.msk.bf16.mxu0 %vm263_vm0, %v244_v8 }
  0x23   : > { %837 = vmatmul.mubr.msk.bf16.vlgmr.msra.gmra.mrb[0].mxu0 %vm263_vm0, %v245_v10  ;;  %847 = vmatpush3.bf16.msra.mxu1 %v914_v11 }
  0x24   : > { %848 = vmatprep.subr.bf16.mxu1 %v915_v12  ;;  %861 = vmatpush3.bf16.msra.mxu0 %v919_v16 }
  0x25   : > { %862 = vmatprep.subr.bf16.mxu0 %v920_v17 }
  0x27   : > { %849 = vmatpush3.bf16.msra.mxu1 %v915_v12 }
  0x28   : > { %850 = vmatprep.subr.bf16.mxu1 %v916_v13  ;;  %863 = vmatpush3.bf16.msra.mxu0 %v920_v17 }
  0x29   : > { %864 = vmatprep.subr.bf16.mxu0 %v921_v18 }
  0x2b   : > { %851 = vmatpush3.bf16.msra.mxu1 %v916_v13 }
  0x2c   : > { %852 = vmatprep.subr.bf16.mxu1 %v917_v14  ;;  %865 = vmatpush3.bf16.msra.mxu0 %v921_v18 }
  0x2d   : > { %866 = vmatprep.subr.bf16.mxu0 %v922_v19 }
  0x2f   : > { %853 = vmatpush3.bf16.msra.mxu1 %v917_v14 }
  0x30   : > { %854 = vmatprep.subr.bf16.mxu1 %v918_v15  ;;  %867 = vmatpush3.bf16.msra.mxu0 %v922_v19 }
  0x31   : > { %868 = vmatprep.subr.bf16.mxu0 %v923_v20 }
  0x33   : > { %855 = vmatpush3.bf16.msra.mxu1 %v918_v15 }
  0x34   : > { %869 = vmatpush3.bf16.msra.mxu0 %v923_v20  ;;  %880 = vmatprep.subr.bf16.mxu1 %v927_v35 }
  0x35   : > { %870 = vmatprep.subr.bf16.mxu0 %v924_v21 }
  0x38   : > { %871 = vmatpush3.bf16.msra.mxu0 %v924_v21 }
  0x39   : > { %872 = vmatprep.subr.bf16.mxu0 %v925_v33 }
  0x3c   : > { %873 = vmatpush3.bf16.msra.mxu0 %v925_v33 }
  0x3d   : > { %874 = vmatprep.subr.bf16.mxu0 %v926_v34 }
  0x40   : > { %875 = vmatpush3.bf16.msra.mxu0 %v926_v34 }
  0xf6   : > { %v838_v23 = vpop.f32.mrb[0].mxu0 }
  0xf7   : > { %v304_v24 = vpop.f32.mrb[1].mxu0  ;;  %v313_v26 = vadd.f32 %v838_v23, %v250_v22 }
  0xf8   : > { %v839_v25 = vpop.f32.mrb[2].mxu0  ;;  %v305_v29 = vadd.f32 %v304_v24, %v250_v22 }
  0xf9   : > { %v316_v27 = vadd.f32 %v839_v25, %v250_v22  ;;  %v307_v28 = vpop.f32.mrb[3].mxu0 }
  0xfa   : > { %v308_v30 = vadd.f32 %v307_v28, %v250_v22 }
  0xfb   : > { %v320_v31 = vpack.c.bf16 %v316_v27, %v313_v26 }
  0xfc   : > { %v319_v32 = vpack.c.bf16 %v308_v30, %v305_v29 }
  0xfe   : > { %856 = vmatprep.mubr.bf16.mxu1 %v319_v32 }
  0xff   : > { %857 = vmatmul.mubr.bf16.vlgmr.msra.gmra.mrb[0].mxu1 %v320_v31 }
 0x100   : > { %881 = vmatpush3.bf16.msra.mxu1 %v927_v35 }
 0x101   : > { %882 = vmatprep.subr.bf16.mxu1 %v928_v36 }
 0x104   : > { %883 = vmatpush3.bf16.msra.mxu1 %v928_v36 }
 0x105   : > { %884 = vmatprep.subr.bf16.mxu1 %v929_v37 }
 0x108   : > { %885 = vmatpush3.bf16.msra.mxu1 %v929_v37 }
 0x109   : > { %886 = vmatprep.subr.bf16.mxu1 %v930_v38 }
 0x10c   : > { %887 = vmatpush3.bf16.msra.mxu1 %v930_v38 }
 0x10d   : > { %888 = vmatprep.subr.bf16.mxu1 %v931_v39 }
 0x110   : > { %889 = vmatpush3.bf16.msra.mxu1 %v931_v39 }
 0x111   : > { %890 = vmatprep.subr.bf16.mxu1 %v932_v40 }
 0x114   : > { %891 = vmatpush3.bf16.msra.mxu1 %v932_v40 }
 0x115   : > { %892 = vmatprep.subr.bf16.mxu1 %v933_v52 }
 0x118   : > { %893 = vmatpush3.bf16.msra.mxu1 %v933_v52 }
 0x119   : > { %894 = vmatprep.subr.bf16.mxu1 %v934_v53 }
 0x11c   : > { %895 = vmatpush3.bf16.msra.mxu1 %v934_v53 }
 0x1d2   : > { %v858_v42 = vpop.f32.mrb[0].mxu1 }
 0x1d3   : > { %v420_v43 = vpop.f32.mrb[1].mxu1  ;;  %v429_v45 = vadd.f32 %v858_v42, %v337_v41 }
 0x1d4   : > { %v859_v44 = vpop.f32.mrb[2].mxu1  ;;  %v421_v48 = vadd.f32 %v420_v43, %v337_v41 }
 0x1d5   : > { %v432_v46 = vadd.f32 %v859_v44, %v337_v41  ;;  %v423_v47 = vpop.f32.mrb[3].mxu1 }
 0x1d6   : > { %v424_v49 = vadd.f32 %v423_v47, %v337_v41 }
 0x1d7   : > { %v436_v50 = vpack.c.bf16 %v432_v46, %v429_v45 }
 0x1d8   : > { %v435_v51 = vpack.c.bf16 %v424_v49, %v421_v48 }
 0x1da   : > { %876 = vmatprep.mubr.bf16.mxu0 %v435_v51 }
 0x1db   : > { %877 = vmatmul.mubr.bf16.vlgmr.msra.gmra.mrb[4].mxu0 %v436_v50 }
 0x2ae   : > { %v878_v55 = vpop.f32.mrb[4].mxu0 }
 0x2af   : > { %v536_v56 = vpop.f32.mrb[5].mxu0  ;;  %v545_v58 = vadd.f32 %v878_v55, %v453_v54 }
 0x2b0   : > { %v879_v57 = vpop.f32.mrb[6].mxu0  ;;  %v537_v61 = vadd.f32 %v536_v56, %v453_v54 }
 0x2b1   : > { %v548_v59 = vadd.f32 %v879_v57, %v453_v54  ;;  %v539_v60 = vpop.f32.mrb[7].mxu0 }
 0x2b2   : > { %v540_v62 = vadd.f32 %v539_v60, %v453_v54 }
 0x2b3   : > { %v552_v63 = vpack.c.bf16 %v548_v59, %v545_v58 }
 0x2b4   : > { %v551_v0 = vpack.c.bf16 %v540_v62, %v537_v61 }
 0x2b6   : > { %896 = vmatprep.mubr.bf16.mxu1 %v551_v0 }
 0x2b7   : > { %897 = vmatmul.mubr.bf16.vlgmr.msra.gmra.mrb[4].mxu1 %v552_v63 }
 0x38a   : > { %v898_v2 = vpop.f32.mrb[4].mxu1 }
 0x38b   : > { %v661_v3 = vadd.f32 %v898_v2, %v569_v1  ;;  %v652_v4 = vpop.f32.mrb[5].mxu1 }
 0x38c   : > { %v653_v5 = vadd.f32 %v652_v4, %v569_v1  ;;  %v899_v6 = vpop.f32.mrb[6].mxu1 }
 0x38d   : > { %v794_v7 = vmul.f32 -1.442695, %v661_v3  ;;  %v664_v8 = vadd.f32 %v899_v6, %v569_v1  ;;  %v655_v9 = vpop.f32.mrb[7].mxu1 }
 0x38e   : > { %v792_v10 = vmul.f32 -1.442695, %v653_v5  ;;  %v656_v11 = vadd.f32 %v655_v9, %v569_v1 }
 0x38f   : > { %935 = vpow2.f32 %v794_v7  ;;  %v795_v12 = vmul.f32 -1.442695, %v664_v8 }
 0x390   : > { %937 = vpow2.f32 %v792_v10  ;;  %v793_v13 = vmul.f32 -1.442695, %v656_v11 }
 0x391   : > { %939 = vpow2.f32 %v795_v12 }
 0x392   : > { %941 = vpow2.f32 %v793_v13 }
 0x399   : > { %v936_v14 = vpop.eup %935 }
 0x39a   : > { %v938_v15 = vpop.eup %937  ;;  %v681_v19 = vadd.f32 1.0, %v936_v14 }
 0x39b   : > { %v940_v16 = vpop.eup %939  ;;  %v679_v17 = vadd.f32 1.0, %v938_v15 }
 0x39c   : > { %v942_v18 = vpop.eup %941  ;;  %v682_v20 = vadd.f32 1.0, %v940_v16 }
 0x39d   : > { %943 = vrcp.f32 %v679_v17  ;;  %v680_v21 = vadd.f32 1.0, %v942_v18 }
 0x39f   : > { %945 = vrcp.f32 %v680_v21 }
 0x3a0   : > { %947 = vrcp.f32 %v681_v19 }
 0x3a1   : > { %949 = vrcp.f32 %v682_v20 }
 0x3a7   : > { %v944_v22 = vpop.eup %943 }
 0x3a8   : > { %692 = vst.msk [vmem:[%s233_s22] sm:$0xff] %vm691_vm1, %v944_v22 }
 0x3a9   : > { %v946_v23 = vpop.eup %945 }
 0x3aa   : > { %v948_v24 = vpop.eup %947  ;;  %693 = vst.msk [vmem:[%s233_s22 + $0x8] sm:$0xff] %vm691_vm1, %v946_v23 }
 0x3ab   : > { %v950_v25 = vpop.eup %949  ;;  %694 = vst.msk [vmem:[%s233_s22 + $0x10] sm:$0xff] %vm691_vm1, %v948_v24 }
 0x3ac   : > { %695 = vst.msk [vmem:[%s233_s22 + $0x18] sm:$0xff] %vm691_vm1, %v950_v25 }
 0x3ad PF: > { %s22_s26 = sadd.s32 1, %s971_s26  }
 0x3ae   : > { %p19_p9 = scmp.ge.s32.totalorder %s22_s26, 4  }
 0x3b0   :  { %21 = sbr.rel (!%p19_p9) target bundleno = 16 (0x10), region = 70 }

</bundles_post_ra>
